<compile_context>
chip_gen: v5e
topology: v5e:2x2
jax: 0.10.0
libtpu: 0.0.40
codegen_flags: <defaults>
</compile_context>

<pallas_src>
import jax
import jax.numpy as jnp
from jax.experimental import pallas as pl
from jax.experimental.pallas import tpu as pltpu

_IN_FEATURES = 28 * 28
_LANE = 128      # TPU lane width
_SUBLANE = 8     # f32 sublane count


def _round_up(x, m):
    return (x + m - 1) // m * m


def _mlp_kernel(x_ref, w1_ref, b1_ref, w2_ref, b2_ref, w3_ref, b3_ref, o_ref):
    # x_ref: (TB, 784) tile; weights/biases are full (padded) arrays, VMEM-resident.
    x = x_ref[...]
    h1 = jnp.dot(x, w1_ref[...], preferred_element_type=jnp.float32) + b1_ref[...]
    h2 = jnp.dot(h1, w2_ref[...], preferred_element_type=jnp.float32) + b2_ref[...]
    h3 = jnp.dot(h2, w3_ref[...], preferred_element_type=jnp.float32) + b3_ref[...]
    o_ref[...] = h3.astype(o_ref.dtype)


def prepare_params(params):
    """One-time prep: transpose PyTorch (out, in) weights -> (in, out) and
    zero-pad hidden / class dims to lane width (128).  Zero padding only adds
    exact-zero contributions, so results are bit-equivalent to the unpadded math."""
    (w1, b1), (w2, b2), (w3, b3) = params
    H = w1.shape[0]
    C = w3.shape[0]
    Hp = _round_up(H, _LANE)
    Cp = _round_up(C, _LANE)

    def pad2(a, rows, cols):
        return jnp.pad(a, ((0, rows - a.shape[0]), (0, cols - a.shape[1])))

    w1t = pad2(w1.T.astype(jnp.float32), _IN_FEATURES, Hp)
    w2t = pad2(w2.T.astype(jnp.float32), Hp, Hp)
    w3t = pad2(w3.T.astype(jnp.float32), Hp, Cp)
    b1r = pad2(b1.reshape(1, H).astype(jnp.float32), 1, Hp)
    b2r = pad2(b2.reshape(1, H).astype(jnp.float32), 1, Hp)
    b3r = pad2(b3.reshape(1, C).astype(jnp.float32), 1, Cp)
    return (w1t, b1r, w2t, b2r, w3t, b3r), C


def mlp_forward(x, prepared, *, tb=None):
    """x: any shape that flattens to (-1, 784), float32. Returns (B, num_classes)."""
    (w1t, b1r, w2t, b2r, w3t, b3r), C = prepared
    x2d = x.reshape(-1, _IN_FEATURES).astype(jnp.float32)
    B = x2d.shape[0]
    Cp = w3t.shape[1]

    # Batch tile: multiple of 8 (f32 sublanes), capped at 512 rows so the
    # double-buffered input/output tiles stay a few MiB on every generation.
    TB = tb if tb is not None else min(512, _round_up(B, _SUBLANE))
    TB = max(_SUBLANE, _round_up(TB, _SUBLANE))
    Bp = _round_up(B, TB)
    if Bp != B:
        x2d = jnp.pad(x2d, ((0, Bp - B), (0, 0)))

    def resident(shape):
        # Same block index every grid step -> stays VMEM-resident (no re-DMA).
        return pl.BlockSpec(shape, lambda i: (0,) * len(shape))

    out = pl.pallas_call(
        _mlp_kernel,
        out_shape=jax.ShapeDtypeStruct((Bp, Cp), jnp.float32),
        grid=(Bp // TB,),
        in_specs=[
            pl.BlockSpec((TB, _IN_FEATURES), lambda i: (i, 0)),
            resident(w1t.shape), resident(b1r.shape),
            resident(w2t.shape), resident(b2r.shape),
            resident(w3t.shape), resident(b3r.shape),
        ],
        out_specs=pl.BlockSpec((TB, Cp), lambda i: (i, 0)),
        compiler_params=pltpu.CompilerParams(
            dimension_semantics=("parallel",),   # megacore sharding on v7x
            vmem_limit_bytes=16 << 20,           # right-sized; actual use < 5 MiB
        ),
    )(x2d, w1t, b1r, w2t, b2r, w3t, b3r)

    return out[:B, :C]


def init_params(key, hidden_size, num_classes):
    """Deterministic init mimicking nn.Linear's U(-1/sqrt(fan_in), 1/sqrt(fan_in))."""
    def linear(key, fan_in, fan_out):
        kw, kb = jax.random.split(key)
        bound = 1.0 / jnp.sqrt(fan_in)
        w = jax.random.uniform(kw, (fan_out, fan_in), jnp.float32, -bound, bound)
        b = jax.random.uniform(kb, (fan_out,), jnp.float32, -bound, bound)
        return w, b

    k1, k2, k3 = jax.random.split(key, 3)
    return (
        linear(k1, _IN_FEATURES, hidden_size),
        linear(k2, hidden_size, hidden_size),
        linear(k3, hidden_size, num_classes),
    )


def _ref_forward(x, params):
    x2d = x.reshape(-1, _IN_FEATURES)
    out = x2d
    for w, b in params:
        out = out @ w.T + b
    return out


if __name__ == "__main__":
    hidden_size = 32
    num_classes = 10

    key = jax.random.PRNGKey(0)
    kx, kp, kx2 = jax.random.split(key, 3)

    params = init_params(kp, hidden_size, num_classes)
    prepared = prepare_params(params)   # one-time weight transpose / pad

    # Test 1: MNIST-like input (B, 1, 28, 28), single grid step.
    x = jax.random.normal(kx, (8, 1, 28, 28), jnp.float32)
    out = jax.block_until_ready(mlp_forward(x, prepared))
    assert out.shape == (8, num_classes)
    assert jnp.allclose(out, _ref_forward(x, params), atol=1e-4, rtol=1e-4)

    # Test 2: batch that doesn't divide the tile -> multi-step grid + batch padding.
    x2 = jax.random.normal(kx2, (10, 1, 28, 28), jnp.float32)
    out2 = jax.block_until_ready(mlp_forward(x2, prepared, tb=8))
    assert out2.shape == (10, num_classes)
    assert jnp.allclose(out2, _ref_forward(x2, params), atol=1e-4, rtol=1e-4)

    print("KERNEL_OK")
</pallas_src>

<mosaic_0001>
module attributes {stable_mosaic.version = 11 : i64} {
  func.func @_mlp_kernel(%arg0: i32, %arg1: memref<8x784xf32, #tpu.memory_space<vmem>>, %arg2: memref<784x128xf32, #tpu.memory_space<vmem>>, %arg3: memref<1x128xf32, #tpu.memory_space<vmem>>, %arg4: memref<128x128xf32, #tpu.memory_space<vmem>>, %arg5: memref<1x128xf32, #tpu.memory_space<vmem>>, %arg6: memref<128x128xf32, #tpu.memory_space<vmem>>, %arg7: memref<1x128xf32, #tpu.memory_space<vmem>>, %arg8: memref<8x128xf32, #tpu.memory_space<vmem>>) attributes {dimension_semantics = [#tpu.dimension_semantics<parallel>], iteration_bounds = array<i64: 1>, scalar_prefetch = 0 : i64, scratch_operands = 0 : i64, tpu.core_type = #tpu.core_type<tc>, window_params = [{transform_indices = @transform_0, window_bounds = array<i64: 8, 784>}, {pipeline_mode = #tpu.pipeline_mode<synchronous>, transform_indices = @transform_1, window_bounds = array<i64: 784, 128>}, {pipeline_mode = #tpu.pipeline_mode<synchronous>, transform_indices = @transform_2, window_bounds = array<i64: 1, 128>}, {pipeline_mode = #tpu.pipeline_mode<synchronous>, transform_indices = @transform_3, window_bounds = array<i64: 128, 128>}, {pipeline_mode = #tpu.pipeline_mode<synchronous>, transform_indices = @transform_4, window_bounds = array<i64: 1, 128>}, {pipeline_mode = #tpu.pipeline_mode<synchronous>, transform_indices = @transform_5, window_bounds = array<i64: 128, 128>}, {pipeline_mode = #tpu.pipeline_mode<synchronous>, transform_indices = @transform_6, window_bounds = array<i64: 1, 128>}, {transform_indices = @transform_7, window_bounds = array<i64: 8, 128>}]} {
    %c0 = arith.constant 0 : index
    %c0_0 = arith.constant 0 : index
    %0 = vector.load %arg1[%c0, %c0_0] : memref<8x784xf32, #tpu.memory_space<vmem>>, vector<8x784xf32>
    %c0_1 = arith.constant 0 : index
    %c0_2 = arith.constant 0 : index
    %1 = vector.load %arg2[%c0_1, %c0_2] : memref<784x128xf32, #tpu.memory_space<vmem>>, vector<784x128xf32>
    %cst = arith.constant dense<0.000000e+00> : vector<8x128xf32>
    %2 = tpu.matmul %0, %1, %cst {dimension_numbers = #tpu.dot_dimension_numbers<[1], [0], [0], [1], [0, 0, 1, 1], [], []>} : vector<8x784xf32>, vector<784x128xf32>, vector<8x128xf32> -> vector<8x128xf32>
    %c0_3 = arith.constant 0 : index
    %c0_4 = arith.constant 0 : index
    %3 = vector.load %arg3[%c0_3, %c0_4] : memref<1x128xf32, #tpu.memory_space<vmem>>, vector<1x128xf32>
    %4 = vector.broadcast %3 : vector<1x128xf32> to vector<8x128xf32>
    %5 = arith.addf %2, %4 : vector<8x128xf32>
    %c0_5 = arith.constant 0 : index
    %c0_6 = arith.constant 0 : index
    %6 = vector.load %arg4[%c0_5, %c0_6] : memref<128x128xf32, #tpu.memory_space<vmem>>, vector<128x128xf32>
    %cst_7 = arith.constant dense<0.000000e+00> : vector<8x128xf32>
    %7 = tpu.matmul %5, %6, %cst_7 {dimension_numbers = #tpu.dot_dimension_numbers<[1], [0], [0], [1], [0, 0, 1, 1], [], []>} : vector<8x128xf32>, vector<128x128xf32>, vector<8x128xf32> -> vector<8x128xf32>
    %c0_8 = arith.constant 0 : index
    %c0_9 = arith.constant 0 : index
    %8 = vector.load %arg5[%c0_8, %c0_9] : memref<1x128xf32, #tpu.memory_space<vmem>>, vector<1x128xf32>
    %9 = vector.broadcast %8 : vector<1x128xf32> to vector<8x128xf32>
    %10 = arith.addf %7, %9 : vector<8x128xf32>
    %c0_10 = arith.constant 0 : index
    %c0_11 = arith.constant 0 : index
    %11 = vector.load %arg6[%c0_10, %c0_11] : memref<128x128xf32, #tpu.memory_space<vmem>>, vector<128x128xf32>
    %cst_12 = arith.constant dense<0.000000e+00> : vector<8x128xf32>
    %12 = tpu.matmul %10, %11, %cst_12 {dimension_numbers = #tpu.dot_dimension_numbers<[1], [0], [0], [1], [0, 0, 1, 1], [], []>} : vector<8x128xf32>, vector<128x128xf32>, vector<8x128xf32> -> vector<8x128xf32>
    %c0_13 = arith.constant 0 : index
    %c0_14 = arith.constant 0 : index
    %13 = vector.load %arg7[%c0_13, %c0_14] : memref<1x128xf32, #tpu.memory_space<vmem>>, vector<1x128xf32>
    %14 = vector.broadcast %13 : vector<1x128xf32> to vector<8x128xf32>
    %15 = arith.addf %12, %14 : vector<8x128xf32>
    %c0_15 = arith.constant 0 : index
    %c0_16 = arith.constant 0 : index
    %16 = vector.load %arg8[%c0_15, %c0_16] : memref<8x128xf32, #tpu.memory_space<vmem>>, vector<8x128xf32>
    tpu.vector_store %arg8[%c0_15, %c0_16], %15 {strides = array<i32>} : memref<8x128xf32, #tpu.memory_space<vmem>>, vector<8x128xf32>,
    return
  }
  func.func @transform_0(%arg0: i32) -> (i32, i32) {
    %c0_i32 = arith.constant 0 : i32
    %c0_i32_0 = arith.constant 0 : i32
    return %arg0, %c0_i32 : i32, i32
  }
  func.func @transform_1(%arg0: i32) -> (i32, i32) {
    %c0_i32 = arith.constant 0 : i32
    %c0_i32_0 = arith.constant 0 : i32
    %c0_i32_1 = arith.constant 0 : i32
    return %c0_i32, %c0_i32_0 : i32, i32
  }
  func.func @transform_2(%arg0: i32) -> (i32, i32) {
    %c0_i32 = arith.constant 0 : i32
    %c0_i32_0 = arith.constant 0 : i32
    %c0_i32_1 = arith.constant 0 : i32
    return %c0_i32, %c0_i32_0 : i32, i32
  }
  func.func @transform_3(%arg0: i32) -> (i32, i32) {
    %c0_i32 = arith.constant 0 : i32
    %c0_i32_0 = arith.constant 0 : i32
    %c0_i32_1 = arith.constant 0 : i32
    return %c0_i32, %c0_i32_0 : i32, i32
  }
  func.func @transform_4(%arg0: i32) -> (i32, i32) {
    %c0_i32 = arith.constant 0 : i32
    %c0_i32_0 = arith.constant 0 : i32
    %c0_i32_1 = arith.constant 0 : i32
    return %c0_i32, %c0_i32_0 : i32, i32
  }
  func.func @transform_5(%arg0: i32) -> (i32, i32) {
    %c0_i32 = arith.constant 0 : i32
    %c0_i32_0 = arith.constant 0 : i32
    %c0_i32_1 = arith.constant 0 : i32
    return %c0_i32, %c0_i32_0 : i32, i32
  }
  func.func @transform_6(%arg0: i32) -> (i32, i32) {
    %c0_i32 = arith.constant 0 : i32
    %c0_i32_0 = arith.constant 0 : i32
    %c0_i32_1 = arith.constant 0 : i32
    return %c0_i32, %c0_i32_0 : i32, i32
  }
  func.func @transform_7(%arg0: i32) -> (i32, i32) {
    %c0_i32 = arith.constant 0 : i32
    %c0_i32_0 = arith.constant 0 : i32
    return %arg0, %c0_i32 : i32, i32
  }
}

</mosaic_0001>

<bundles_post_ra>
// kernel: tpu_custom_call.1
= control target key start
LH: loop header
LB: loop body
LE: loop exit
PB: predicated region body
PF: predicated region fallthrough
CT: control target
= control target key end

     0   :  { %12 = vsyncpa [#allocation3], 0  ;;  %s651_s0 = inlined_call_operand.hbm [shape: f32[8,784], index: 0, kind: input, shape index: {}]   ;;  %s652_s1 = inlined_call_operand.hbm [shape: f32[784,128], index: 1, kind: input, shape index: {}]   ;;  %s653_s2 = inlined_call_operand.vmem [shape: f32[1,128], index: 2, kind: input, shape index: {}]   ;;  %s654_s3 = inlined_call_operand.hbm [shape: f32[128,128], index: 3, kind: input, shape index: {}]   ;;  %s655_s4 = inlined_call_operand.vmem [shape: f32[1,128], index: 4, kind: input, shape index: {}]   ;;  %s656_s5 = inlined_call_operand.hbm [shape: f32[128,128], index: 5, kind: input, shape index: {}]   ;;  %s657_s6 = inlined_call_operand.vmem [shape: f32[1,128], index: 6, kind: input, shape index: {}]   ;;  %s658_s7 = inlined_call_operand.hbm [shape: f32[8,128], index: 7, kind: output, shape index: {}]  }
   0x1   :  { %13 = vsyncpa [#allocation6], 0 }
   0x2   :  { %14 = vsyncpa [#allocation9], 0  ;;  %s31_s26 = sshll.u32 %s652_s1, 4  ;;  %s32_s26 = int_to_ptr.hbm [resolvable:$true] %s31_s26 }
   0x3   :  { %15 = vsyncpa [#allocation4], 0  ;;  %s580_s27 = smov [#allocation5]   ;;  %s21_s8 = sshll.u32 %s651_s0, 4  ;;  %s22_s8 = int_to_ptr.hbm [resolvable:$true] %s21_s8 }
   0x4   :  { %s33_s28 = sshll.u32 %s580_s27, 4  ;;  %s581_s9 = smov 128   ;;  %s34_s28 = int_to_ptr.vmem [resolvable:$true] %s33_s28 }
   0x5   :  { %s582_s10 = smov 8   ;;  %s583_s11 = smov [#allocation2]  }
   0x6   :  { %39 = dma.hbm_to_vmem [thread:$0]  %s32_s26, 12544, %s34_s28, [#allocation6], %s581_s9, %s581_s9, %s582_s10  }
   0x7   :  { %s23_s12 = sshll.u32 %s583_s11, 4  ;;  %s46_s15 = sshll.u32 %s654_s3, 4  ;;  %s24_s12 = int_to_ptr.vmem [resolvable:$true] %s23_s12  ;;  %s47_s15 = int_to_ptr.hbm [resolvable:$true] %s46_s15 }
   0x8   :  { %26 = dma.hbm_to_vmem [thread:$0]  %s22_s8, 896, %s24_s12, [#allocation3]  }
   0x9   :  { %s61_s17 = sshll.u32 %s656_s5, 4  ;;  %s584_s18 = smov [#allocation7]   ;;  %s62_s17 = int_to_ptr.hbm [resolvable:$true] %s61_s17 }
   0xa   :  { %s48_s19 = sshll.u32 %s584_s18, 4  ;;  %s585_s0 = smov [#allocation8]   ;;  %s49_s19 = int_to_ptr.vmem [resolvable:$true] %s48_s19 }
   0xb   :  { %54 = dma.hbm_to_vmem [thread:$0]  %s47_s15, 2048, %s49_s19, [#allocation6], %s581_s9, %s581_s9, %s582_s10  }
   0xc   :  { %s63_s20 = sshll.u32 %s585_s0, 4  ;;  %s64_s20 = int_to_ptr.vmem [resolvable:$true] %s63_s20 }
   0xd   :  { %69 = dma.hbm_to_vmem [thread:$0]  %s62_s17, 2048, %s64_s20, [#allocation9], %s581_s9, %s581_s9, %s582_s10  }
   0xe   :  { %572 = dma.done.wait [#allocation3], 896  }
   0xf   :  { %573 = vsyncadd [#allocation3], 4294966400 }
  0x10   :  { %574 = dma.done.wait [#allocation6], 14592  }
  0x11   :  { %575 = vsyncadd [#allocation6], 4294952704 }
  0x12   :  { %576 = dma.done.wait [#allocation9], 2048  }
  0x13   :  { %577 = vsyncadd [#allocation9], 4294965248  ;;  %v110_v0 = vld [vmem:[#allocation5 + $0x78] sm:$0xff]  ;;  %v109_v1 = vld [vmem:[#allocation5 + $0x70] sm:$0xff]  ;;  %vm197_vm0 = vcmask 130048   ;;  %s586_s24 = smov [#allocation10]  }
  0x14   :  { %v126_v2 = vld [vmem:[#allocation5 + $0xf8] sm:$0xff]  ;;  %201 = vmatpush.msra.mxu0 %v110_v0  ;;  %v125_v3 = vld [vmem:[#allocation5 + $0xf0] sm:$0xff]  ;;  %v108_v4 = vld [vmem:[#allocation5 + $0x68] sm:$0xff]  ;;  %s427_s25 = sshll.u32 %s586_s24, 4  ;;  %s429_s28 = sshll.u32 %s658_s7, 4  ;;  %s428_s25 = int_to_ptr.vmem [resolvable:$true] %s427_s25  ;;  %s430_s28 = int_to_ptr.hbm [resolvable:$true] %s429_s28 }
  0x15   :  { %221 = vmatpush.msra.mxu1 %v126_v2  ;;  %v124_v5 = vld [vmem:[#allocation5 + $0xe8] sm:$0xff]  ;;  %v107_v6 = vld [vmem:[#allocation5 + $0x60] sm:$0xff]  ;;  %v106_v8 = vld [vmem:[#allocation5 + $0x58] sm:$0xff] }
  0x16   :  { %202 = vmatpush.msra.mxu0 %v109_v1  ;;  %v123_v7 = vld [vmem:[#allocation5 + $0xe0] sm:$0xff]  ;;  %v122_v9 = vld [vmem:[#allocation5 + $0xd8] sm:$0xff]  ;;  %v105_v10 = vld [vmem:[#allocation5 + $0x50] sm:$0xff] }
  0x17   :  { %222 = vmatpush.msra.mxu1 %v125_v3  ;;  %v142_v11 = vld [vmem:[#allocation5 + $0x178] sm:$0xff]  ;;  %v121_v12 = vld [vmem:[#allocation5 + $0xd0] sm:$0xff]  ;;  %v140_v15 = vld [vmem:[#allocation5 + $0x168] sm:$0xff] }
  0x18   :  { %203 = vmatpush.msra.mxu0 %v108_v4  ;;  %241 = vmatpush.msra.mxu2 %v142_v11  ;;  %v141_v13 = vld [vmem:[#allocation5 + $0x170] sm:$0xff]  ;;  %v158_v14 = vld [vmem:[#allocation5 + $0x1f8] sm:$0xff]  ;;  %v104_v17 = vld [vmem:[#allocation5 + $0x48] sm:$0xff] }
  0x19   :  { %223 = vmatpush.msra.mxu1 %v124_v5  ;;  %v157_v16 = vld [vmem:[#allocation5 + $0x1f0] sm:$0xff]  ;;  %v120_v18 = vld [vmem:[#allocation5 + $0xc8] sm:$0xff]  ;;  %261 = vmatpush.msra.mxu3 %v158_v14  ;;  %v139_v19 = vld [vmem:[#allocation5 + $0x160] sm:$0xff] }
  0x1a   :  { %204 = vmatpush.msra.mxu0 %v107_v6  ;;  %242 = vmatpush.msra.mxu2 %v141_v13  ;;  %v156_v20 = vld [vmem:[#allocation5 + $0x1e8] sm:$0xff]  ;;  %v103_v21 = vld [vmem:[#allocation5 + $0x40] sm:$0xff]  ;;  %v138_v23 = vld [vmem:[#allocation5 + $0x158] sm:$0xff] }
  0x1b   :  { %224 = vmatpush.msra.mxu1 %v123_v7  ;;  %v119_v22 = vld [vmem:[#allocation5 + $0xc0] sm:$0xff]  ;;  %262 = vmatpush.msra.mxu3 %v157_v16  ;;  %v102_v25 = vld [vmem:[#allocation5 + $0x38] sm:$0xff]  ;;  %v137_v27 = vld [vmem:[#allocation5 + $0x150] sm:$0xff] }
  0x1c   :  { %205 = vmatpush.msra.mxu0 %v106_v8  ;;  %243 = vmatpush.msra.mxu2 %v140_v15  ;;  %v155_v24 = vld [vmem:[#allocation5 + $0x1e0] sm:$0xff]  ;;  %v118_v26 = vld [vmem:[#allocation5 + $0xb8] sm:$0xff]  ;;  %v101_v29 = vld [vmem:[#allocation5 + $0x30] sm:$0xff] }
  0x1d   :  { %225 = vmatpush.msra.mxu1 %v122_v9  ;;  %263 = vmatpush.msra.mxu3 %v156_v20  ;;  %v154_v28 = vld [vmem:[#allocation5 + $0x1d8] sm:$0xff]  ;;  %v117_v30 = vld [vmem:[#allocation5 + $0xb0] sm:$0xff]  ;;  %v136_v31 = vld [vmem:[#allocation5 + $0x148] sm:$0xff] }
  0x1e   :  { %206 = vmatpush.msra.mxu0 %v105_v10  ;;  %244 = vmatpush.msra.mxu2 %v139_v19  ;;  %v153_v32 = vld [vmem:[#allocation5 + $0x1d0] sm:$0xff]  ;;  %v100_v33 = vld [vmem:[#allocation5 + $0x28] sm:$0xff]  ;;  %v135_v35 = vld [vmem:[#allocation5 + $0x140] sm:$0xff] }
  0x1f   :  { %226 = vmatpush.msra.mxu1 %v121_v12  ;;  %264 = vmatpush.msra.mxu3 %v155_v24  ;;  %v116_v34 = vld [vmem:[#allocation5 + $0xa8] sm:$0xff]  ;;  %v99_v37 = vld [vmem:[#allocation5 + $0x20] sm:$0xff]  ;;  %v134_v39 = vld [vmem:[#allocation5 + $0x138] sm:$0xff] }
  0x20   :  { %207 = vmatpush.msra.mxu0 %v104_v17  ;;  %245 = vmatpush.msra.mxu2 %v138_v23  ;;  %v152_v36 = vld [vmem:[#allocation5 + $0x1c8] sm:$0xff]  ;;  %v115_v38 = vld [vmem:[#allocation5 + $0xa0] sm:$0xff]  ;;  %v98_v41 = vld [vmem:[#allocation5 + $0x18] sm:$0xff] }
  0x21   :  { %227 = vmatpush.msra.mxu1 %v120_v18  ;;  %265 = vmatpush.msra.mxu3 %v154_v28  ;;  %v151_v40 = vld [vmem:[#allocation5 + $0x1c0] sm:$0xff]  ;;  %v114_v42 = vld [vmem:[#allocation5 + $0x98] sm:$0xff]  ;;  %v133_v43 = vld [vmem:[#allocation5 + $0x130] sm:$0xff] }
  0x22   :  { %208 = vmatpush.msra.mxu0 %v103_v21  ;;  %246 = vmatpush.msra.mxu2 %v137_v27  ;;  %v150_v44 = vld [vmem:[#allocation5 + $0x1b8] sm:$0xff]  ;;  %v97_v45 = vld [vmem:[#allocation5 + $0x10] sm:$0xff]  ;;  %v132_v47 = vld [vmem:[#allocation5 + $0x128] sm:$0xff] }
  0x23   :  { %228 = vmatpush.msra.mxu1 %v119_v22  ;;  %266 = vmatpush.msra.mxu3 %v153_v32  ;;  %v113_v46 = vld [vmem:[#allocation5 + $0x90] sm:$0xff]  ;;  %v96_v49 = vld [vmem:[#allocation5 + $0x8] sm:$0xff]  ;;  %v131_v51 = vld [vmem:[#allocation5 + $0x120] sm:$0xff] }
  0x24   :  { %209 = vmatpush.msra.mxu0 %v102_v25  ;;  %247 = vmatpush.msra.mxu2 %v136_v31  ;;  %v149_v48 = vld [vmem:[#allocation5 + $0x1b0] sm:$0xff]  ;;  %v112_v50 = vld [vmem:[#allocation5 + $0x88] sm:$0xff]  ;;  %v95_v53 = vld [vmem:[#allocation5] sm:$0xff] }
  0x25   :  { %229 = vmatpush.msra.mxu1 %v118_v26  ;;  %267 = vmatpush.msra.mxu3 %v152_v36  ;;  %v148_v52 = vld [vmem:[#allocation5 + $0x1a8] sm:$0xff]  ;;  %v111_v54 = vld [vmem:[#allocation5 + $0x80] sm:$0xff]  ;;  %v174_v55 = vld [vmem:[#allocation5 + $0x278] sm:$0xff] }
  0x26   :  { %210 = vmatpush.msra.mxu0 %v101_v29  ;;  %248 = vmatpush.msra.mxu2 %v135_v35  ;;  %v190_v56 = vld [vmem:[#allocation5 + $0x2f8] sm:$0xff]  ;;  %v147_v58 = vld [vmem:[#allocation5 + $0x1a0] sm:$0xff]  ;;  %v173_v59 = vld [vmem:[#allocation5 + $0x270] sm:$0xff] }
  0x27   :  { %230 = vmatpush.msra.mxu1 %v117_v30  ;;  %268 = vmatpush.msra.mxu3 %v151_v40  ;;  %v130_v57 = vld [vmem:[#allocation5 + $0x118] sm:$0xff]  ;;  %v189_v60 = vld [vmem:[#allocation5 + $0x2f0] sm:$0xff]  ;;  %v172_v63 = vld [vmem:[#allocation5 + $0x268] sm:$0xff] }
  0x28   :  { %211 = vmatpush.msra.mxu0 %v100_v33  ;;  %249 = vmatpush.msra.mxu2 %v134_v39  ;;  %v129_v61 = vld [vmem:[#allocation5 + $0x110] sm:$0xff]  ;;  %v146_v62 = vld [vmem:[#allocation5 + $0x198] sm:$0xff]  ;;  %v188_v0 = vld [vmem:[#allocation5 + $0x2e8] sm:$0xff] }
  0x29   :  { %231 = vmatpush.msra.mxu1 %v116_v34  ;;  %269 = vmatpush.msra.mxu3 %v150_v44  ;;  %v128_v1 = vld [vmem:[#allocation5 + $0x108] sm:$0xff]  ;;  %v145_v2 = vld [vmem:[#allocation5 + $0x190] sm:$0xff]  ;;  %v171_v3 = vld [vmem:[#allocation5 + $0x260] sm:$0xff] }
  0x2a   :  { %212 = vmatpush.msra.mxu0 %v99_v37  ;;  %250 = vmatpush.msra.mxu2 %v133_v43  ;;  %v187_v4 = vld [vmem:[#allocation5 + $0x2e0] sm:$0xff]  ;;  %v170_v5 = vld [vmem:[#allocation5 + $0x258] sm:$0xff]  ;;  %v144_v7 = vld [vmem:[#allocation5 + $0x188] sm:$0xff] }
  0x2b   :  { %232 = vmatpush.msra.mxu1 %v115_v38  ;;  %270 = vmatpush.msra.mxu3 %v149_v48  ;;  %v127_v6 = vld [vmem:[#allocation5 + $0x100] sm:$0xff]  ;;  %v186_v8 = vld [vmem:[#allocation5 + $0x2d8] sm:$0xff]  ;;  %v169_v11 = vld [vmem:[#allocation5 + $0x250] sm:$0xff] }
  0x2c   :  { %213 = vmatpush.msra.mxu0 %v98_v41  ;;  %251 = vmatpush.msra.mxu2 %v132_v47  ;;  %v90_v9 = vld [vmem:[#allocation2 + $0x10] sm:$0xff]  ;;  %v143_v10 = vld [vmem:[#allocation5 + $0x180] sm:$0xff]  ;;  %v185_v12 = vld [vmem:[#allocation5 + $0x2d0] sm:$0xff] }
  0x2d   :  { %233 = vmatpush.msra.mxu1 %v114_v42  ;;  %271 = vmatpush.msra.mxu3 %v148_v52  ;;  %v192_v13 = vld [vmem:[#allocation5 + $0x308] sm:$0xff]  ;;  %v91_v17 = vld [vmem:[#allocation2 + $0x18] sm:$0xff]  ;;  %v89_v18 = vld [vmem:[#allocation2 + $0x8] sm:$0xff] }
  0x2e   :  { %214 = vmatpush.msra.mxu0 %v97_v45  ;;  %252 = vmatpush.msra.mxu2 %v131_v51  ;;  %v88_v14 = vld [vmem:[#allocation2] sm:$0xff]  ;;  %v167_v19 = vld [vmem:[#allocation5 + $0x240] sm:$0xff]  ;;  %v166_v23 = vld [vmem:[#allocation5 + $0x238] sm:$0xff] }
  0x2f   :  { %234 = vmatpush.msra.mxu1 %v113_v46  ;;  %272 = vmatpush.msra.mxu3 %v147_v58  ;;  %v168_v15 = vld [vmem:[#allocation5 + $0x248] sm:$0xff]  ;;  %v183_v20 = vld [vmem:[#allocation5 + $0x2c0] sm:$0xff]  ;;  %v182_v24 = vld [vmem:[#allocation5 + $0x2b8] sm:$0xff] }
  0x30   :  { %215 = vmatpush.msra.mxu0 %v96_v49  ;;  %253 = vmatpush.msra.mxu2 %v130_v57  ;;  %v184_v16 = vld [vmem:[#allocation5 + $0x2c8] sm:$0xff]  ;;  %v191_v21 = vld [vmem:[#allocation5 + $0x300] sm:$0xff]  ;;  %v94_v25 = vld [vmem:[#allocation2 + $0x30] sm:$0xff] }
  0x31   :  { %235 = vmatpush.msra.mxu1 %v112_v50  ;;  %273 = vmatpush.msra.mxu3 %v146_v62  ;;  %v356_v22 = vld [vmem:[#allocation7 + $0x78] sm:$0xff]  ;;  %v355_v26 = vld [vmem:[#allocation7 + $0x70] sm:$0xff]  ;;  %v165_v27 = vld [vmem:[#allocation5 + $0x230] sm:$0xff] }
  0x32   :  { %216 = vmatpush.msra.mxu0 %v95_v53  ;;  %254 = vmatpush.msra.mxu2 %v129_v61  ;;  %v181_v28 = vld [vmem:[#allocation5 + $0x2b0] sm:$0xff]  ;;  %v354_v29 = vld [vmem:[#allocation7 + $0x68] sm:$0xff]  ;;  %v164_v30 = vld [vmem:[#allocation5 + $0x228] sm:$0xff] }
  0x33   :  { %236 = vmatpush.msra.mxu1 %v111_v54  ;;  %274 = vmatpush.msra.mxu3 %v145_v2  ;;  %v180_v31 = vld [vmem:[#allocation5 + $0x2a8] sm:$0xff]  ;;  %v353_v32 = vld [vmem:[#allocation7 + $0x60] sm:$0xff]  ;;  %v163_v33 = vld [vmem:[#allocation5 + $0x220] sm:$0xff] }
  0x34   :  { %281 = vmatpush.msrb.mxu0 %v174_v55  ;;  %255 = vmatpush.msra.mxu2 %v128_v1  ;;  %v179_v34 = vld [vmem:[#allocation5 + $0x2a0] sm:$0xff]  ;;  %v352_v35 = vld [vmem:[#allocation7 + $0x58] sm:$0xff]  ;;  %v162_v36 = vld [vmem:[#allocation5 + $0x218] sm:$0xff] }
  0x35   :  { %301 = vmatpush.msrb.mxu1 %v190_v56  ;;  %275 = vmatpush.msra.mxu3 %v144_v7  ;;  %v178_v37 = vld [vmem:[#allocation5 + $0x298] sm:$0xff]  ;;  %v351_v38 = vld [vmem:[#allocation7 + $0x50] sm:$0xff]  ;;  %v161_v39 = vld [vmem:[#allocation5 + $0x210] sm:$0xff] }
  0x36   :  { %282 = vmatpush.msrb.mxu0 %v173_v59  ;;  %256 = vmatpush.msra.mxu2 %v127_v6  ;;  %v177_v40 = vld [vmem:[#allocation5 + $0x290] sm:$0xff]  ;;  %v350_v41 = vld [vmem:[#allocation7 + $0x48] sm:$0xff]  ;;  %v160_v42 = vld [vmem:[#allocation5 + $0x208] sm:$0xff] }
  0x37   :  { %302 = vmatpush.msrb.mxu1 %v189_v60  ;;  %257 = vmatmul.f32.vlgmr.msra.gmra.mxu2 %v90_v9  ;;  %v176_v43 = vld [vmem:[#allocation5 + $0x288] sm:$0xff]  ;;  %v349_v44 = vld [vmem:[#allocation7 + $0x40] sm:$0xff]  ;;  %v159_v45 = vld [vmem:[#allocation5 + $0x200] sm:$0xff] }
  0x38   :  { %283 = vmatpush.msrb.mxu0 %v172_v63  ;;  %276 = vmatpush.msra.mxu3 %v143_v10  ;;  %v175_v46 = vld [vmem:[#allocation5 + $0x280] sm:$0xff]  ;;  %v92_v47 = vld [vmem:[#allocation2 + $0x20] sm:$0xff]  ;;  %v93_v48 = vld [vmem:[#allocation2 + $0x28] sm:$0xff] }
  0x39   :  { %303 = vmatpush.msrb.mxu1 %v188_v0  ;;  %335 = vmatpush.msrb.mxu2 %v192_v13  ;;  %v348_v49 = vld [vmem:[#allocation7 + $0x38] sm:$0xff]  ;;  %v347_v50 = vld [vmem:[#allocation7 + $0x30] sm:$0xff]  ;;  %v346_v51 = vld [vmem:[#allocation7 + $0x28] sm:$0xff] }
  0x3a   :  { %284 = vmatpush.msrb.mxu0 %v171_v3  ;;  %277 = vmatmul.f32.vlgmr.msra.gmra.mxu3 %v91_v17  ;;  %v345_v52 = vld [vmem:[#allocation7 + $0x20] sm:$0xff]  ;;  %v344_v53 = vld [vmem:[#allocation7 + $0x18] sm:$0xff]  ;;  %v343_v54 = vld [vmem:[#allocation7 + $0x10] sm:$0xff] }
  0x3b   :  { %304 = vmatpush.msrb.mxu1 %v187_v4  ;;  %217 = vmatmul.f32.vlgmr.msra.gmra.mxu0 %v88_v14  ;;  %v342_v55 = vld [vmem:[#allocation7 + $0x8] sm:$0xff]  ;;  %v341_v56 = vld [vmem:[#allocation7] sm:$0xff]  ;;  %v396_v57 = vld [vmem:[#allocation8 + $0x78] sm:$0xff] }
  0x3c   :  { %285 = vmatpush.msrb.mxu0 %v170_v5  ;;  %237 = vmatmul.f32.vlgmr.msra.gmra.mxu1 %v89_v18  ;;  %v395_v58 = vld [vmem:[#allocation8 + $0x70] sm:$0xff]  ;;  %v394_v59 = vld [vmem:[#allocation8 + $0x68] sm:$0xff]  ;;  %v393_v60 = vld [vmem:[#allocation8 + $0x60] sm:$0xff] }
  0x3d   :  { %305 = vmatpush.msrb.mxu1 %v186_v8  ;;  %336 = vmatpush.msrb.mxu2 %v191_v21  ;;  %v449_v61 = vld [vmem:[%s653_s2] ss:$0 sm:$0xff]  ;;  %v391_v0 = vld [vmem:[#allocation8 + $0x50] sm:$0xff]  ;;  %v390_v2 = vld [vmem:[#allocation8 + $0x48] sm:$0xff] }
  0x3e   :  { %286 = vmatpush.msrb.mxu0 %v169_v11  ;;  %361 = vmatpush.msrb.mxu3 %v356_v22  ;;  %v392_v62 = vld [vmem:[#allocation8 + $0x58] sm:$0xff]  ;;  %v389_v4 = vld [vmem:[#allocation8 + $0x40] sm:$0xff]  ;;  %v387_v8 = vld [vmem:[#allocation8 + $0x30] sm:$0xff] }
  0x3f   :  { %306 = vmatpush.msrb.mxu1 %v185_v12  ;;  %441 = vmatmul.msk.f32.vlgmr.msrb.gmra.mxu2 %vm197_vm0, %v94_v25  ;;  %v388_v6 = vld [vmem:[#allocation8 + $0x38] sm:$0xff]  ;;  %v386_v10 = vld [vmem:[#allocation8 + $0x28] sm:$0xff]  ;;  %v385_v12 = vld [vmem:[#allocation8 + $0x20] sm:$0xff] }
  0x40   :  { %287 = vmatpush.msrb.mxu0 %v168_v15  ;;  %362 = vmatpush.msrb.mxu3 %v355_v26  ;;  %v384_v14 = vld [vmem:[#allocation8 + $0x18] sm:$0xff]  ;;  %v383_v15 = vld [vmem:[#allocation8 + $0x10] sm:$0xff]  ;;  %v382_v22 = vld [vmem:[#allocation8 + $0x8] sm:$0xff] }
  0x41   :  { %307 = vmatpush.msrb.mxu1 %v184_v16  ;;  %401 = vmatpush.msra.mxu2 %v396_v57 }
  0x42   :  { %288 = vmatpush.msrb.mxu0 %v167_v19  ;;  %363 = vmatpush.msrb.mxu3 %v354_v29 }
  0x43   :  { %308 = vmatpush.msrb.mxu1 %v183_v20  ;;  %402 = vmatpush.msra.mxu2 %v395_v58 }
  0x44   :  { %289 = vmatpush.msrb.mxu0 %v166_v23  ;;  %364 = vmatpush.msrb.mxu3 %v353_v32  ;;  %v381_v23 = vld [vmem:[#allocation8] sm:$0xff] }
  0x45   :  { %309 = vmatpush.msrb.mxu1 %v182_v24  ;;  %403 = vmatpush.msra.mxu2 %v394_v59  ;;  %v450_v24 = vld [vmem:[%s655_s4] ss:$0 sm:$0xff] }
  0x46   :  { %290 = vmatpush.msrb.mxu0 %v165_v27  ;;  %365 = vmatpush.msrb.mxu3 %v352_v35  ;;  %v451_v27 = vld [vmem:[%s657_s6] ss:$0 sm:$0xff] }
  0x47   :  { %310 = vmatpush.msrb.mxu1 %v181_v28  ;;  %404 = vmatpush.msra.mxu2 %v393_v60 }
  0x48   :  { %291 = vmatpush.msrb.mxu0 %v164_v30  ;;  %366 = vmatpush.msrb.mxu3 %v351_v38 }
  0x49   :  { %311 = vmatpush.msrb.mxu1 %v180_v31  ;;  %405 = vmatpush.msra.mxu2 %v392_v62 }
  0x4a   :  { %292 = vmatpush.msrb.mxu0 %v163_v33  ;;  %367 = vmatpush.msrb.mxu3 %v350_v41 }
  0x4b   :  { %312 = vmatpush.msrb.mxu1 %v179_v34  ;;  %406 = vmatpush.msra.mxu2 %v391_v0 }
  0x4c   :  { %293 = vmatpush.msrb.mxu0 %v162_v36  ;;  %368 = vmatpush.msrb.mxu3 %v349_v44 }
  0x4d   :  { %313 = vmatpush.msrb.mxu1 %v178_v37  ;;  %407 = vmatpush.msra.mxu2 %v390_v2 }
  0x4e   :  { %294 = vmatpush.msrb.mxu0 %v161_v39  ;;  %369 = vmatpush.msrb.mxu3 %v348_v49 }
  0x4f   :  { %314 = vmatpush.msrb.mxu1 %v177_v40  ;;  %408 = vmatpush.msra.mxu2 %v389_v4 }
  0x50   :  { %295 = vmatpush.msrb.mxu0 %v160_v42  ;;  %370 = vmatpush.msrb.mxu3 %v347_v50 }
  0x51   :  { %315 = vmatpush.msrb.mxu1 %v176_v43  ;;  %409 = vmatpush.msra.mxu2 %v388_v6 }
  0x52   :  { %296 = vmatpush.msrb.mxu0 %v159_v45  ;;  %371 = vmatpush.msrb.mxu3 %v346_v51 }
  0x53   :  { %316 = vmatpush.msrb.mxu1 %v175_v46  ;;  %297 = vmatmul.f32.vlgmr.msrb.gmra.mxu0 %v92_v47 }
  0x54   :  { %317 = vmatmul.f32.vlgmr.msrb.gmra.mxu1 %v93_v48  ;;  %372 = vmatpush.msrb.mxu3 %v345_v52 }
  0x55   :  { %410 = vmatpush.msra.mxu2 %v387_v8 }
  0x56   :  { %373 = vmatpush.msrb.mxu3 %v344_v53 }
  0x57   :  { %411 = vmatpush.msra.mxu2 %v386_v10 }
  0x58   :  { %374 = vmatpush.msrb.mxu3 %v343_v54 }
  0x59   :  { %412 = vmatpush.msra.mxu2 %v385_v12 }
  0x5a   :  { %375 = vmatpush.msrb.mxu3 %v342_v55 }
  0x5b   :  { %413 = vmatpush.msra.mxu2 %v384_v14 }
  0x5c   :  { %376 = vmatpush.msrb.mxu3 %v341_v56 }
  0x5d   :  { %414 = vmatpush.msra.mxu2 %v383_v15 }
  0x5f   :  { %415 = vmatpush.msra.mxu2 %v382_v22 }
  0x61   :  { %416 = vmatpush.msra.mxu2 %v381_v23 }
  0xb8   :  { %v218_v63 = vpop.f32.mrf.mxu0 }
  0xb9   :  { %v219_v1 = vadd.f32 %v449_v61, %v218_v63  ;;  %v238_v3 = vpop.f32.mrf.mxu1 }
  0xba   :  { %v258_v7 = vpop.f32.mrf.mxu2 }
  0xbb   :  { %v239_v5 = vadd.f32 %v238_v3, %v219_v1 }
  0xbd   :  { %v259_v9 = vadd.f32 %v258_v7, %v239_v5  ;;  %v278_v11 = vpop.f32.mrf.mxu3 }
  0xbf   :  { %v279_v13 = vadd.f32 %v278_v11, %v259_v9 }
  0xc2   :  { %v338_v19 = vpop.f32.mrf.mxu2 }
  0xd0   :  { %v298_v16 = vpop.f32.mrf.mxu0 }
  0xd1   :  { %v318_v17 = vpop.f32.mrf.mxu1  ;;  %v299_v18 = vadd.f32 %v298_v16, %v279_v13 }
  0xd3   :  { %v319_v20 = vadd.f32 %v318_v17, %v299_v18 }
  0xd5   :  { %v339_v21 = vadd.f32 %v338_v19, %v319_v20 }
  0xd7   :  { %377 = vmatmul.f32.vlgmr.msrb.gmra.mxu3 %v339_v21 }
 0x15a   :  { %v378_v25 = vpop.f32.mrf.mxu3 }
 0x15b   :  { %v379_v26 = vadd.f32 %v450_v24, %v378_v25 }
 0x15d   :  { %417 = vmatmul.f32.vlgmr.msra.gmra.mxu2 %v379_v26 }
 0x1e0   :  { %v418_v28 = vpop.f32.mrf.mxu2 }
 0x1e1   :  { %v419_v29 = vadd.f32 %v451_v27, %v418_v28 }
 0x1e3   :  { %421 = vst [vmem:[#allocation10] sm:$0xff] %v419_v29 }
 0x1e4   :  { %432 = dma.vmem_to_hbm [thread:$0]  %s428_s25, 128, %s430_s28, [#allocation4]  }
 0x1e5   :  { %578 = dma.done.wait [#allocation4], 128  }
 0x1e6   :  { %579 = vsyncadd [#allocation4], 4294967168 }
 0x1e7   :  { %437 = vsyncpa [#allocation3], 1 }
 0x1e8   :  { %438 = vsyncpa [#allocation6], 1 }
 0x1e9   :  { %439 = vsyncpa [#allocation9], 1 }
 0x1ea   :  { %440 = vsyncpa [#allocation4], 1 }

</bundles_post_ra>
